<compile_context>
chip_gen: v6e
topology: v6e:2x2x1
jax: 0.10.0
libtpu: 0.0.40
codegen_flags: <defaults>
</compile_context>

<pallas_src>
import functools

import jax
import jax.numpy as jnp
from jax.experimental import pallas as pl
from jax.experimental.pallas import tpu as pltpu

_TARGET_TILE_BYTES = 2 << 20       # ~2 MiB streaming tiles (85%+ of roofline)
_SINGLE_PASS_MAX_TILE = 8 << 20    # allow larger tiles to stay single-pass
                                   # (saves a full second read of x)


def _cdiv(a, b):
    return -(-a // b)


def _round_up(x, m):
    return _cdiv(x, m) * m


def _sublane_quantum(dtype):
    itemsize = jnp.dtype(dtype).itemsize
    if itemsize >= 4:
        return 8
    if itemsize == 2:
        return 16
    return 32


def _vmem_limit(tile_bytes_per_array):
    # Two buffers (double-buffering) per pipelined array + headroom for
    # compiler temporaries; clamp to a v7x-safe (64 MiB/TC) budget.
    live = sum(2 * int(t) for t in tile_bytes_per_array)
    return int(min(max(live + (8 << 20), 16 << 20), 56 << 20))


def _choose_tb(n, d, itemsize, q):
    """Rows per block: ~2 MiB tile, sublane-quantized, >=2 grid steps if possible."""
    row_bytes = max(1, d * itemsize)
    tb = max(q, (_TARGET_TILE_BYTES // row_bytes) // q * q)
    if n >= 2 * q:
        # Keep at least 2 grid steps so v7x megacore uses both TensorCores.
        tb = min(tb, _round_up(_cdiv(n, 2), q))
    tb = min(tb, _round_up(n, q))
    return tb


# ----------------------------------------------------------------------------
# Single-pass kernel: each block holds TB complete flattened samples (TB, D).
# ----------------------------------------------------------------------------
def _binarize_rows_kernel(x_ref, o_ref, *, d):
    x = x_ref[...]
    # Per-row sum accumulated in f32; only a (TB, 1) temporary.
    row_sum = jnp.sum(x, axis=-1, keepdims=True, dtype=jnp.float32)
    mean = row_sum / jnp.float32(d)
    # Compare in f32 so bf16/fp16 inputs match an f32-thresholding reference.
    o_ref[...] = (x.astype(jnp.float32) >= mean).astype(o_ref.dtype)


def _binarize_single_pass(x2, n, d):
    itemsize = jnp.dtype(x2.dtype).itemsize
    q = _sublane_quantum(x2.dtype)
    tb = _choose_tb(n, d, itemsize, q)
    tile_bytes = tb * d * itemsize

    return pl.pallas_call(
        functools.partial(_binarize_rows_kernel, d=d),
        out_shape=jax.ShapeDtypeStruct((n, d), x2.dtype),
        grid=(pl.cdiv(n, tb),),
        in_specs=[pl.BlockSpec((tb, d), lambda i: (i, 0))],
        out_specs=pl.BlockSpec((tb, d), lambda i: (i, 0)),
        compiler_params=pltpu.CompilerParams(
            dimension_semantics=("parallel",),
            vmem_limit_bytes=_vmem_limit((tile_bytes, tile_bytes)),
        ),
        cost_estimate=pl.CostEstimate(
            flops=2 * n * d,
            transcendentals=0,
            bytes_accessed=2 * n * d * itemsize,
        ),
    )(x2)


# ----------------------------------------------------------------------------
# Two-pass path for very large D: XLA mean pre-pass + streaming threshold
# over squarish ~2 MiB (tb, td) tiles.
# TODO(synk): fusing the mean pass in via a phase/reduction grid axis would
# save the means HBM round-trip; modest (~few %) win, not done here.
# ----------------------------------------------------------------------------
def _threshold_kernel(x_ref, mean_ref, o_ref):
    x = x_ref[...]
    mean = mean_ref[...]  # (TB, 1) f32 per-sample means
    o_ref[...] = (x.astype(jnp.float32) >= mean).astype(o_ref.dtype)


def _binarize_two_pass(x2, n, d):
    itemsize = jnp.dtype(x2.dtype).itemsize
    q = _sublane_quantum(x2.dtype)

    # Pass 1: per-sample means in f32 (cheap, HBM-bound XLA reduce).
    means = (jnp.sum(x2, axis=-1, dtype=jnp.float32) / jnp.float32(d)).reshape(n, 1)

    # Squarish tiles: tb ~ 64-256 rows, td a lane-dense multiple of 128,
    # keeping each tile around the 2 MiB target (no giant-td padding blow-up).
    tb = 8 * q
    if n >= 2 * q:
        tb = min(tb, _round_up(_cdiv(n, 2), q))
    tb = min(tb, _round_up(n, q))
    td = (_TARGET_TILE_BYTES // (tb * itemsize)) // 128 * 128
    td = max(128, min(td, 8192))
    td = min(td, _round_up(d, 128))

    x_tile = tb * td * itemsize
    m_tile = tb * 4

    return pl.pallas_call(
        _threshold_kernel,
        out_shape=jax.ShapeDtypeStruct((n, d), x2.dtype),
        grid=(pl.cdiv(n, tb), pl.cdiv(d, td)),
        in_specs=[
            pl.BlockSpec((tb, td), lambda i, j: (i, j)),
            pl.BlockSpec((tb, 1), lambda i, j: (i, 0)),
        ],
        out_specs=pl.BlockSpec((tb, td), lambda i, j: (i, j)),
        compiler_params=pltpu.CompilerParams(
            dimension_semantics=("parallel", "parallel"),
            vmem_limit_bytes=_vmem_limit((x_tile, m_tile, x_tile)),
        ),
        cost_estimate=pl.CostEstimate(
            flops=n * d,
            transcendentals=0,
            bytes_accessed=2 * n * d * itemsize + 2 * n * 4,
        ),
    )(x2, means)


def binarized_module(x, *, force_two_pass=False):
    """JAX/Pallas equivalent of BinarizedModule.forward (BinarizedF.forward).

    x: (N, ...) array. Returns same shape/dtype of 0.0/1.0, element 1.0 iff
    it is >= the mean of its own flattened batch sample.
    """
    n = x.shape[0]
    d = 1
    for s in x.shape[1:]:
        d *= s
    x2 = x.reshape(n, d)

    itemsize = jnp.dtype(x.dtype).itemsize
    q = _sublane_quantum(x.dtype)

    # Single-pass whenever a q-row block over the full D fits the tile budget
    # (it halves the HBM read traffic versus the two-pass path).
    if q * d * itemsize <= _SINGLE_PASS_MAX_TILE and not force_two_pass:
        out2 = _binarize_single_pass(x2, n, d)
    else:
        out2 = _binarize_two_pass(x2, n, d)
    return out2.reshape(x.shape)


if __name__ == "__main__":
    key = jax.random.PRNGKey(0)
    # Small NCHW feature map, consistent with the conv-net module.
    x = jax.random.normal(key, (2, 4, 16, 16), dtype=jnp.float32)

    out = jax.block_until_ready(binarized_module(x))
    assert out.shape == x.shape and out.dtype == x.dtype

    # Pure-JAX reference of BinarizedF.forward.
    means = jnp.mean(x.reshape(x.shape[0], -1), axis=-1).reshape(-1, 1, 1, 1)
    ref = jnp.where(x >= means, 1.0, 0.0).astype(x.dtype)

    def _check(o):
        if bool(jnp.all(o == ref)):
            return
        # Only knife-edge elements (|x - mean| ~ ulp) may legitimately differ
        # due to reduction-order differences in the row sum.
        near = jnp.abs(x - means) <= 1e-5
        assert bool(jnp.all((o == ref) | near)), "mismatch vs reference"

    _check(out)

    # Also exercise the large-D (two-pass streaming threshold) path.
    out2 = jax.block_until_ready(binarized_module(x, force_two_pass=True))
    assert out2.shape == x.shape and out2.dtype == x.dtype
    _check(out2)

    print("KERNEL_OK")
</pallas_src>

<mosaic_0001>
module attributes {stable_mosaic.version = 11 : i64} {
  func.func @_binarize_rows_kernel(%arg0: i32, %arg1: memref<8x1024xf32, #tpu.memory_space<vmem>>, %arg2: memref<8x1024xf32, #tpu.memory_space<vmem>>) attributes {dimension_semantics = [#tpu.dimension_semantics<parallel>], iteration_bounds = array<i64: 1>, scalar_prefetch = 0 : i64, scratch_operands = 0 : i64, tpu.core_type = #tpu.core_type<tc>, window_params = [{transform_indices = @transform_0, window_bounds = array<i64: 8, 1024>}, {transform_indices = @transform_1, window_bounds = array<i64: 8, 1024>}]} {
    %c0 = arith.constant 0 : index
    %c0_0 = arith.constant 0 : index
    %0 = vector.load %arg1[%c0, %c0_0] : memref<8x1024xf32, #tpu.memory_space<vmem>>, vector<8x1024xf32>
    %cst = arith.constant dense<0.000000e+00> : vector<8xf32>
    %1 = vector.multi_reduction <add>, %0, %cst [1] : vector<8x1024xf32> to vector<8xf32>
    %2 = vector.shape_cast %1 : vector<8xf32> to vector<8x1xf32>
    %cst_1 = arith.constant 1.024000e+03 : f32
    %3 = vector.broadcast %cst_1 : f32 to vector<8x1xf32>
    %4 = arith.divf %2, %3 : vector<8x1xf32>
    %5 = vector.broadcast %4 : vector<8x1xf32> to vector<8x1024xf32>
    %6 = arith.cmpf oge, %0, %5 : vector<8x1024xf32>
    %7 = arith.extui %6 : vector<8x1024xi1> to vector<8x1024xi32>
    %8 = arith.sitofp %7 : vector<8x1024xi32> to vector<8x1024xf32>
    %c0_2 = arith.constant 0 : index
    %c0_3 = arith.constant 0 : index
    %9 = vector.load %arg2[%c0_2, %c0_3] : memref<8x1024xf32, #tpu.memory_space<vmem>>, vector<8x1024xf32>
    tpu.vector_store %arg2[%c0_2, %c0_3], %8 {strides = array<i32>} : memref<8x1024xf32, #tpu.memory_space<vmem>>, vector<8x1024xf32>,
    return
  }
  func.func @transform_0(%arg0: i32) -> (i32, i32) {
    %c0_i32 = arith.constant 0 : i32
    %c0_i32_0 = arith.constant 0 : i32
    return %arg0, %c0_i32 : i32, i32
  }
  func.func @transform_1(%arg0: i32) -> (i32, i32) {
    %c0_i32 = arith.constant 0 : i32
    %c0_i32_0 = arith.constant 0 : i32
    return %arg0, %c0_i32 : i32, i32
  }
}

</mosaic_0001>

<bundles_post_ra>
// kernel: tpu_custom_call.1
= control target key start
LH: loop header
LB: loop body
LE: loop exit
PB: predicated region body
PF: predicated region fallthrough
CT: control target
= control target key end

     0   :  { %6 = vsyncpa [#allocation3], 0  ;;  %s354_s0 = inlined_call_operand.hbm [shape: f32[2,1024], index: 0, kind: input, shape index: {}]   ;;  %s355_s1 = inlined_call_operand.hbm [shape: f32[2,1024], index: 1, kind: output, shape index: {}]  }
   0x1   :  { %7 = vsyncpa [#allocation4], 0 }
   0x2   :  { %12 = vsyncadd [#allocation3], 768  ;;  %s282_s6 = smov [#allocation2]  }
   0x3   :  { %s13_s7 = sshll.u32 %s282_s6, 4  ;;  %s14_s7 = int_to_ptr.vmem [resolvable:$true] %s13_s7 }
   0x4   :  { %s246_s8 = scalar_lea.vmem %s14_s7, 256  ;;  %s250_s9 = scalar_lea.vmem %s14_s7, 1024 }
   0x5   :  { %p247_p0 = scmp.ne.s32.totalorder %s14_s7, %s246_s8  ;;  %p251_p1 = scmp.lt.s32.totalorder %s14_s7, %s14_s7 }
   0x6   :  { %p252_p2 = scmp.lt.s32.totalorder %s250_s9, %s246_s8 }
   0x8   :  { %p253_p3 = por %p252_p2, %p251_p1 }
   0xa   :  { %p254_p4 = pnand %p253_p3, %p247_p0 }
   0xc   :  { %257 = shalt.err (!%p254_p4)
}
   0xd   :  { %s283_s10 = smov 256   ;;  %s284_s11 = smov 16  }
   0xe   :  { %19 = dma.hbm_to_vmem [thread:$0]  %s354_s0, 256, %s14_s7, [#allocation3], %s283_s10, %s283_s10, %s284_s11  }
   0xf   :  { %278 = dma.done.wait [#allocation3], 1024  }
  0x10   :  { %279 = vsyncadd [#allocation3], 4294966272  ;;  %v46_v0 = vlaneseq  ;;  %v285_v1 = vmov 1983009808   ;;  %v308_v6 = vld [vmem:[#allocation2] sm:$0xff]  ;;  %v310_v7 = vld [vmem:[#allocation2 + $0x8] sm:$0xff] }
  0x11   :  { %v44_v2 = vunpack.c.l.s4 %v285_v1  ;;  %v312_v8 = vld [vmem:[#allocation2 + $0x10] sm:$0xff]  ;;  %v314_v9 = vld [vmem:[#allocation2 + $0x18] sm:$0xff]  ;;  %v316_v10 = vld [vmem:[#allocation2 + $0x20] sm:$0xff]  ;;  %v286_v45 = vmov 269488144  }
  0x12   :  { %v47_v3 = vshrl.u32 %v46_v0, 7  ;;  %v318_v11 = vld [vmem:[#allocation2 + $0x28] sm:$0xff]  ;;  %v39_v12 = vcombine.low %v308_v6, %v312_v8  ;;  %v40_v13 = vcombine.high %v308_v6, %v312_v8  ;;  %v324_v14 = vld [vmem:[#allocation2 + $0x30] sm:$0xff]  ;;  %v326_v15 = vld [vmem:[#allocation2 + $0x38] sm:$0xff]  ;;  %v75_v16 = vcombine.low %v310_v7, %v314_v9 }
  0x13   :  { %v45_v4 = vunpack.c.0.s8 %v44_v2  ;;  %v41_v17 = vcombine.low %v316_v10, %v324_v14  ;;  %v42_v18 = vcombine.high %v316_v10, %v324_v14  ;;  %v77_v21 = vcombine.low %v318_v11, %v326_v15 }
  0x14   :  { %v76_v24 = vcombine.high %v310_v7, %v314_v9  ;;  %v78_v25 = vcombine.high %v318_v11, %v326_v15  ;;  %v132_v46 = vunpack.c.l.s4 %v286_v45  ;;  %v287_v47 = vmov 842150450  }
  0x15   :  { %v48_v5 = vsub.s32 %v45_v4, %v47_v3  ;;  %v139_v48 = vunpack.c.l.s4 %v287_v47  ;;  %v288_v49 = vmov 1414812756   ;;  %v289_v51 = vmov 1987475062  }
  0x16   :  { %v146_v50 = vunpack.c.l.s4 %v288_v49  ;;  %v153_v52 = vunpack.c.l.s4 %v289_v51  ;;  %v133_v53 = vunpack.c.0.s8 %v132_v46 }
  0x17   :  { %v49_v19 = vrot.slane %v39_v12, %v48_v5  ;;  %v56_v20 = vrot.slane %v40_v13, %v48_v5  ;;  %v63_v22 = vrot.slane %v41_v17, %v48_v5  ;;  %v70_v23 = vrot.slane %v42_v18, %v48_v5 }
  0x18   :  { %v85_v26 = vrot.slane %v75_v16, %v48_v5  ;;  %v99_v30 = vrot.slane %v77_v21, %v48_v5  ;;  %v92_v33 = vrot.slane %v76_v24, %v48_v5  ;;  %v106_v34 = vrot.slane %v78_v25, %v48_v5 }
  0x19   :  { %v71_v27 = vcombine.low %v49_v19, %v63_v22  ;;  %v72_v28 = vcombine.high %v49_v19, %v63_v22  ;;  %v73_v29 = vcombine.low %v56_v20, %v70_v23  ;;  %v74_v31 = vcombine.high %v56_v20, %v70_v23 }
  0x1a   :  { %v107_v35 = vcombine.low %v85_v26, %v99_v30  ;;  %v108_v37 = vcombine.high %v85_v26, %v99_v30  ;;  %v109_v39 = vcombine.low %v92_v33, %v106_v34  ;;  %v110_v41 = vcombine.high %v92_v33, %v106_v34 }
  0x1b   :  { %v119_v32 = vadd.f32 %v72_v28, %v71_v27  ;;  %v140_v54 = vunpack.c.0.s8 %v139_v48  ;;  %v147_v55 = vunpack.c.0.s8 %v146_v50  ;;  %v154_v56 = vunpack.c.0.s8 %v153_v52 }
  0x1c   :  { %v136_v57 = vsub.s32 %v133_v53, %v47_v3 }
  0x1d   :  { %v120_v36 = vadd.f32 %v119_v32, %v73_v29  ;;  %v143_v58 = vsub.s32 %v140_v54, %v47_v3  ;;  %v150_v59 = vsub.s32 %v147_v55, %v47_v3  ;;  %v157_v60 = vsub.s32 %v154_v56, %v47_v3 }
  0x1e   :  { %v290_v3 = vmov 0.0  }
  0x1f   :  { %v121_v38 = vadd.f32 %v120_v36, %v74_v31 }
  0x21   :  { %v122_v40 = vadd.f32 %v121_v38, %v107_v35 }
  0x23   :  { %v123_v42 = vadd.f32 %v122_v40, %v108_v37 }
  0x25   :  { %v124_v43 = vadd.f32 %v123_v42, %v109_v39 }
  0x27   :  { %v125_v44 = vadd.f32 %v124_v43, %v110_v41 }
  0x29   :  { %126 = vadd.xlane.f32.xlu0 %v125_v44 }
  0xb2   :  { %v127_v61 = vpop.xlane.xlu0 %126 }
  0xb3   :  { %v129_v62 = vmul.f32 0.0009765625, %v127_v61 }
  0xb5   :  { %v137_v63 = vrot.slane %v129_v62, %v136_v57  ;;  %v144_v0 = vrot.slane %v129_v62, %v143_v58  ;;  %v151_v1 = vrot.slane %v129_v62, %v150_v59  ;;  %v158_v2 = vrot.slane %v129_v62, %v157_v60 }
  0xb7   :  { %vm163_vm0 = vcmp.ge.f32.partialorder %v308_v6, %v137_v63  ;;  %vm164_vm1 = vcmp.ge.f32.partialorder %v310_v7, %v137_v63  ;;  %vm165_vm2 = vcmp.ge.f32.partialorder %v312_v8, %v144_v0  ;;  %vm166_vm3 = vcmp.ge.f32.partialorder %v314_v9, %v144_v0 }
  0xb8   :  { %vm167_vm4 = vcmp.ge.f32.partialorder %v316_v10, %v151_v1  ;;  %vm168_vm5 = vcmp.ge.f32.partialorder %v318_v11, %v151_v1  ;;  %vm169_vm6 = vcmp.ge.f32.partialorder %v324_v14, %v158_v2  ;;  %vm170_vm7 = vcmp.ge.f32.partialorder %v326_v15, %v158_v2 }
  0xb9   :  { %v212_v4 = vsel %vm163_vm0, 1.0, %v290_v3  ;;  %v213_v5 = vsel %vm164_vm1, 1.0, %v290_v3  ;;  %v214_v12 = vsel %vm165_vm2, 1.0, %v290_v3  ;;  %v215_v13 = vsel %vm166_vm3, 1.0, %v290_v3 }
  0xba   :  { %v216_v6 = vsel %vm167_vm4, 1.0, %v290_v3  ;;  %v217_v16 = vsel %vm168_vm5, 1.0, %v290_v3  ;;  %v218_v7 = vsel %vm169_vm6, 1.0, %v290_v3  ;;  %v219_v17 = vsel %vm170_vm7, 1.0, %v290_v3  ;;  %187 = vst [vmem:[#allocation5] sm:$0xff] %v212_v4  ;;  %188 = vst [vmem:[#allocation5 + $0x8] sm:$0xff] %v213_v5 }
  0xbb   :  { %189 = vst [vmem:[#allocation5 + $0x10] sm:$0xff] %v214_v12  ;;  %190 = vst [vmem:[#allocation5 + $0x18] sm:$0xff] %v215_v13 }
  0xbc   :  { %191 = vst [vmem:[#allocation5 + $0x20] sm:$0xff] %v216_v6  ;;  %192 = vst [vmem:[#allocation5 + $0x28] sm:$0xff] %v217_v16 }
  0xbd   :  { %193 = vst [vmem:[#allocation5 + $0x30] sm:$0xff] %v218_v7  ;;  %194 = vst [vmem:[#allocation5 + $0x38] sm:$0xff] %v219_v17 }
  0xbe   :  { %199 = vsyncadd [#allocation4], 768  ;;  %s291_s0 = smov [#allocation5]  }
  0xbf   :  { %s200_s14 = sshll.u32 %s291_s0, 4  ;;  %s201_s14 = int_to_ptr.vmem [resolvable:$true] %s200_s14 }
  0xc0   :  { %s258_s15 = scalar_lea.vmem %s201_s14, 256  ;;  %s262_s16 = scalar_lea.vmem %s201_s14, 1024 }
  0xc1   :  { %p259_p5 = scmp.ne.s32.totalorder %s201_s14, %s258_s15  ;;  %p263_p6 = scmp.lt.s32.totalorder %s201_s14, %s201_s14 }
  0xc2   :  { %p264_p7 = scmp.lt.s32.totalorder %s262_s16, %s258_s15 }
  0xc4   :  { %p265_p8 = por %p264_p7, %p263_p6 }
  0xc6   :  { %p266_p9 = pnand %p265_p8, %p259_p5 }
  0xc8   :  { %269 = shalt.err (!%p266_p9)
}
  0xc9   :  { %206 = dma.vmem_to_hbm [thread:$0]  %s201_s14, 256, %s355_s1, [#allocation4], %s283_s10, %s283_s10, %s284_s11  }
  0xca   :  { %280 = dma.done.wait [#allocation4], 1024  }
  0xcb   :  { %281 = vsyncadd [#allocation4], 4294966272 }
  0xcc   :  { %210 = vsyncpa [#allocation3], 1 }
  0xcd   :  { %211 = vsyncpa [#allocation4], 1 }

</bundles_post_ra>
